<compile_context>
chip_gen: v7x
topology: tpu7x:2x2x1
jax: 0.10.0
libtpu: 0.0.40
codegen_flags: <defaults>
</compile_context>

<pallas_src>
import functools

import jax
import jax.numpy as jnp
from jax.experimental import pallas as pl
from jax.experimental.pallas import tpu as pltpu

EPS = 1e-12  # torch.nn.functional.normalize default eps

_VMEM_CAP_BYTES = 46 << 20  # keep the working set safe on v7x (64 MiB / TC)


def _round_up(x, m):
    return (x + m - 1) // m * m


def _choose_tm(B):
    """Batch tile: amortize the per-batch-tile weight stream over many rows
    (target >= 512 for the v6e/v7x rooflines), but keep at least 2 batch
    tiles when B allows so the 'parallel' grid axis can shard across v7x's
    two TensorCores."""
    if B <= 256:
        return _round_up(B, 8)
    for tm in (1024, 512, 256):
        if B >= 2 * tm:
            return tm
    return 256


def _choose_tk(F):
    """K (reduction) tile: large enough to amortize the ~0.35 us/grid-step
    overhead at DINOv2-scale feature counts."""
    if F <= 1024:
        return _round_up(F, 128)
    return 2048 if F >= 4096 else 1024


def _vmem_budget(tm, tk, dp, out_bytes):
    return (2 * tm * tk * 2            # x tile  (bf16, double-buffered)
            + 2 * tk * dp * 2          # w tile  (bf16, double-buffered)
            + 2 * tm * dp * out_bytes  # out tile (double-buffered)
            + tm * dp * 4              # f32 accumulator scratch
            + 2 * dp * 4)              # bias (resident)


def _fit_tiles(B, F_pad, dp, out_bytes):
    tm, tk = _choose_tm(B), _choose_tk(F_pad)
    # Shrink until the double-buffered working set fits on every generation.
    while _vmem_budget(tm, tk, dp, out_bytes) > _VMEM_CAP_BYTES and tk > 512:
        tk //= 2
    while _vmem_budget(tm, tk, dp, out_bytes) > _VMEM_CAP_BYTES and tm > 256:
        tm //= 2
    return tm, tk


def _model_normalize_kernel(x_ref, w_ref, b_ref, o_ref, acc_ref):
    # x_ref: [TM, TK] bf16   w_ref: [TK, Dp] bf16   b_ref: [1, Dp] f32
    # o_ref: [TM, Dp]        acc_ref: [TM, Dp] f32 (resident across K axis)
    k = pl.program_id(1)

    # --- model(samples): linear layer on the MXU, f32 accumulation ---
    prod = jnp.dot(x_ref[...], w_ref[...], preferred_element_type=jnp.float32)

    @pl.when(k == 0)
    def _init():
        acc_ref[...] = prod            # no separate zero-fill + read

    @pl.when(k > 0)
    def _accum():
        acc_ref[...] += prod

    @pl.when(k == pl.num_programs(1) - 1)
    def _finalize():
        feats = acc_ref[...] + b_ref[...]                        # [TM, Dp] f32
        # --- F.normalize(feats, p=2, dim=1) ---
        # max(sqrt(s), eps) == sqrt(max(s, eps^2)); rsqrt goes to the EUP.
        sq_norm = jnp.sum(feats * feats, axis=1, keepdims=True)  # [TM, 1]
        inv = jax.lax.rsqrt(jnp.maximum(sq_norm, EPS * EPS))
        o_ref[...] = (feats * inv).astype(o_ref.dtype)


def prepare_params(weight, bias):
    """One-time parameter prep (hoisted out of the per-call path): pad the
    [F, D] weight to tile boundaries and cast to bf16. At DINOv2 scale the
    weight is ~hundreds of MB; doing this every call would cost a full HBM
    pass comparable to the kernel itself."""
    F, D = weight.shape
    tk = _choose_tk(F)
    F_pad = _round_up(F, tk)
    D_pad = _round_up(D, 128)          # lane-dense output stores
    w2d = weight
    if (F_pad, D_pad) != (F, D):
        w2d = jnp.pad(w2d, ((0, F_pad - F), (0, D_pad - D)))
    w2d = w2d.astype(jnp.bfloat16)
    b2d = bias
    if D_pad != D:
        b2d = jnp.pad(b2d, (0, D_pad - D))
    b2d = b2d.reshape(1, D_pad).astype(jnp.float32)
    return w2d, b2d, D                 # D (real) needed to slice the output


@functools.partial(jax.jit, static_argnames=("d_real", "out_dtype"))
def model_with_normalize(samples, w2d, b2d, d_real, out_dtype=jnp.float32):
    """samples: [B, C, H, W]; w2d/b2d: output of prepare_params."""
    B = samples.shape[0]
    F_pad, D_pad = w2d.shape
    out_bytes = jnp.dtype(out_dtype).itemsize

    tm, tk = _fit_tiles(B, F_pad, D_pad, out_bytes)
    assert F_pad % tk == 0
    B_pad = _round_up(B, tm)

    # ---- activation layout glue (flatten NCHW, pad only if needed, bf16) ----
    x2d = samples.reshape(B, -1)
    Fx = x2d.shape[1]
    if (B_pad, F_pad) != (B, Fx):
        x2d = jnp.pad(x2d, ((0, B_pad - B), (0, F_pad - Fx)))
    x2d = x2d.astype(jnp.bfloat16)

    grid = (B_pad // tm, F_pad // tk)
    n_btiles = grid[0]

    cost = pl.CostEstimate(
        flops=2 * B_pad * F_pad * D_pad,
        transcendentals=B_pad,  # one rsqrt per row
        bytes_accessed=(B_pad * F_pad * 2              # x, streamed once
                        + n_btiles * F_pad * D_pad * 2  # weight, per batch tile
                        + D_pad * 4                     # bias
                        + B_pad * D_pad * out_bytes),   # output writeback
    )

    vmem_limit = min(60 << 20,
                     max(32 << 20,
                         _vmem_budget(tm, tk, D_pad, out_bytes) + (8 << 20)))

    out = pl.pallas_call(
        _model_normalize_kernel,
        out_shape=jax.ShapeDtypeStruct((B_pad, D_pad), out_dtype),
        grid_spec=pltpu.PrefetchScalarGridSpec(
            num_scalar_prefetch=0,
            grid=grid,
            in_specs=[
                pl.BlockSpec((tm, tk), lambda i, k: (i, k)),     # x tile
                pl.BlockSpec((tk, D_pad), lambda i, k: (k, 0)),  # weight (K-tiled)
                pl.BlockSpec((1, D_pad), lambda i, k: (0, 0)),   # bias (resident)
            ],
            out_specs=pl.BlockSpec((tm, D_pad), lambda i, k: (i, 0)),
            scratch_shapes=[pltpu.VMEM((tm, D_pad), jnp.float32)],
        ),
        compiler_params=pltpu.CompilerParams(
            # batch axis parallel (megacore on v7x); reduction axis arbitrary.
            dimension_semantics=("parallel", "arbitrary"),
            vmem_limit_bytes=vmem_limit,
        ),
        cost_estimate=cost,
    )(x2d, w2d, b2d)

    # Slice away batch padding and lane padding of D.
    return out[:B, :d_real]


if __name__ == "__main__":
    # Small shapes consistent with an NCHW image input.
    B, C, H, W = 2, 4, 16, 16
    F = C * H * W          # 1024 flattened features
    D = 32                 # embedding dim of the synthetic inner model

    key = jax.random.PRNGKey(0)
    k_x, k_w, k_b = jax.random.split(key, 3)

    samples = jax.random.normal(k_x, (B, C, H, W), dtype=jnp.float32)
    # Deterministic parameter init (synthetic, no checkpoint load).
    weight = jax.random.normal(k_w, (F, D), dtype=jnp.float32) * (1.0 / jnp.sqrt(F))
    bias = jax.random.normal(k_b, (D,), dtype=jnp.float32) * 0.01

    # One-time weight prep (pad + bf16 cast), hoisted out of the call path.
    w2d, b2d, d_real = prepare_params(weight, bias)

    out = model_with_normalize(samples, w2d, b2d, d_real)
    out = jax.block_until_ready(out)
    assert out.shape == (B, D)

    # Reference with matching bf16 matmul precision (f32 accumulation).
    x_bf = samples.reshape(B, F).astype(jnp.bfloat16)
    w_bf = weight.astype(jnp.bfloat16)
    feats_bf = jnp.dot(x_bf, w_bf, preferred_element_type=jnp.float32) + bias
    ref_bf = feats_bf / jnp.maximum(
        jnp.linalg.norm(feats_bf, axis=1, keepdims=True), EPS
    )
    assert jnp.allclose(out, ref_bf, atol=2e-3, rtol=2e-3)

    # Full-precision reference (looser tolerance, bf16 operands by design).
    feats_f32 = samples.reshape(B, F) @ weight + bias
    ref_f32 = feats_f32 / jnp.maximum(
        jnp.linalg.norm(feats_f32, axis=1, keepdims=True), EPS
    )
    assert jnp.allclose(out, ref_f32, atol=3e-2, rtol=3e-2)

    # Row norms should be ~1.
    assert jnp.allclose(jnp.linalg.norm(out, axis=1), 1.0, atol=1e-3)

    print("KERNEL_OK")
</pallas_src>

<mosaic_0001>
module attributes {stable_mosaic.version = 11 : i64} {
  func.func @_model_normalize_kernel(%arg0: i32, %arg1: i32, %arg2: memref<8x1024xbf16, #tpu.memory_space<vmem>>, %arg3: memref<1024x128xbf16, #tpu.memory_space<vmem>>, %arg4: memref<1x128xf32, #tpu.memory_space<vmem>>, %arg5: memref<8x128xf32, #tpu.memory_space<vmem>>, %arg6: memref<8x128xf32, #tpu.memory_space<vmem>>) attributes {dimension_semantics = [#tpu.dimension_semantics<parallel>, #tpu.dimension_semantics<arbitrary>], iteration_bounds = array<i64: 1, 1>, scalar_prefetch = 0 : i64, scratch_operands = 1 : i64, tpu.core_type = #tpu.core_type<tc>, window_params = [{transform_indices = @transform_0, window_bounds = array<i64: 8, 1024>}, {transform_indices = @transform_1, window_bounds = array<i64: 1024, 128>}, {pipeline_mode = #tpu.pipeline_mode<synchronous>, transform_indices = @transform_2, window_bounds = array<i64: 1, 128>}, {transform_indices = @transform_3, window_bounds = array<i64: 8, 128>}]} {
    %c0 = arith.constant 0 : index
    %c0_0 = arith.constant 0 : index
    %0 = vector.load %arg2[%c0, %c0_0] : memref<8x1024xbf16, #tpu.memory_space<vmem>>, vector<8x1024xbf16>
    %c0_1 = arith.constant 0 : index
    %c0_2 = arith.constant 0 : index
    %1 = vector.load %arg3[%c0_1, %c0_2] : memref<1024x128xbf16, #tpu.memory_space<vmem>>, vector<1024x128xbf16>
    %cst = arith.constant dense<0.000000e+00> : vector<8x128xf32>
    %2 = tpu.matmul %0, %1, %cst {dimension_numbers = #tpu.dot_dimension_numbers<[1], [0], [0], [1], [0, 0, 1, 1], [], []>} : vector<8x1024xbf16>, vector<1024x128xbf16>, vector<8x128xf32> -> vector<8x128xf32>
    %c0_i32 = arith.constant 0 : i32
    %3 = arith.cmpi eq, %arg1, %c0_i32 : i32
    %4 = arith.extui %3 : i1 to i32
    %c0_i32_3 = arith.constant 0 : i32
    %5 = arith.cmpi ne, %4, %c0_i32_3 : i32
    scf.if %5 {
      %c0_8 = arith.constant 0 : index
      %c0_9 = arith.constant 0 : index
      %12 = vector.load %arg6[%c0_8, %c0_9] : memref<8x128xf32, #tpu.memory_space<vmem>>, vector<8x128xf32>
      tpu.vector_store %arg6[%c0_8, %c0_9], %2 {strides = array<i32>} : memref<8x128xf32, #tpu.memory_space<vmem>>, vector<8x128xf32>,
    } else {
    }
    %c0_i32_4 = arith.constant 0 : i32
    %6 = arith.cmpi sgt, %arg1, %c0_i32_4 : i32
    %7 = arith.extui %6 : i1 to i32
    %c0_i32_5 = arith.constant 0 : i32
    %8 = arith.cmpi ne, %7, %c0_i32_5 : i32
    scf.if %8 {
      %c0_8 = arith.constant 0 : index
      %c0_9 = arith.constant 0 : index
      %12 = vector.load %arg6[%c0_8, %c0_9] : memref<8x128xf32, #tpu.memory_space<vmem>>, vector<8x128xf32>
      %13 = arith.addf %12, %2 : vector<8x128xf32>
      %c0_10 = arith.constant 0 : index
      %c0_11 = arith.constant 0 : index
      %14 = vector.load %arg6[%c0_10, %c0_11] : memref<8x128xf32, #tpu.memory_space<vmem>>, vector<8x128xf32>
      tpu.vector_store %arg6[%c0_10, %c0_11], %13 {strides = array<i32>} : memref<8x128xf32, #tpu.memory_space<vmem>>, vector<8x128xf32>,
    } else {
    }
    %c0_i32_6 = arith.constant 0 : i32
    %9 = arith.cmpi eq, %arg1, %c0_i32_6 : i32
    %10 = arith.extui %9 : i1 to i32
    %c0_i32_7 = arith.constant 0 : i32
    %11 = arith.cmpi ne, %10, %c0_i32_7 : i32
    scf.if %11 {
      %c0_8 = arith.constant 0 : index
      %c0_9 = arith.constant 0 : index
      %12 = vector.load %arg6[%c0_8, %c0_9] : memref<8x128xf32, #tpu.memory_space<vmem>>, vector<8x128xf32>
      %c0_10 = arith.constant 0 : index
      %c0_11 = arith.constant 0 : index
      %13 = vector.load %arg4[%c0_10, %c0_11] : memref<1x128xf32, #tpu.memory_space<vmem>>, vector<1x128xf32>
      %14 = vector.broadcast %13 : vector<1x128xf32> to vector<8x128xf32>
      %15 = arith.addf %12, %14 : vector<8x128xf32>
      %16 = arith.mulf %15, %15 : vector<8x128xf32>
      %cst_12 = arith.constant dense<0.000000e+00> : vector<8xf32>
      %17 = vector.multi_reduction <add>, %16, %cst_12 [1] : vector<8x128xf32> to vector<8xf32>
      %18 = vector.shape_cast %17 : vector<8xf32> to vector<8x1xf32>
      %cst_13 = arith.constant 1.000000e-24 : f32
      %19 = vector.broadcast %cst_13 : f32 to vector<8x1xf32>
      %20 = arith.maximumf %18, %19 : vector<8x1xf32>
      %21 = math.rsqrt %20 : vector<8x1xf32>
      %22 = vector.broadcast %21 : vector<8x1xf32> to vector<8x128xf32>
      %23 = arith.mulf %15, %22 : vector<8x128xf32>
      %c0_14 = arith.constant 0 : index
      %c0_15 = arith.constant 0 : index
      %24 = vector.load %arg5[%c0_14, %c0_15] : memref<8x128xf32, #tpu.memory_space<vmem>>, vector<8x128xf32>
      tpu.vector_store %arg5[%c0_14, %c0_15], %23 {strides = array<i32>} : memref<8x128xf32, #tpu.memory_space<vmem>>, vector<8x128xf32>,
    } else {
    }
    return
  }
  func.func @transform_0(%arg0: i32, %arg1: i32) -> (i32, i32) {
    %c0_i32 = arith.constant 0 : i32
    return %arg0, %arg1 : i32, i32
  }
  func.func @transform_1(%arg0: i32, %arg1: i32) -> (i32, i32) {
    %c0_i32 = arith.constant 0 : i32
    %c0_i32_0 = arith.constant 0 : i32
    return %arg1, %c0_i32 : i32, i32
  }
  func.func @transform_2(%arg0: i32, %arg1: i32) -> (i32, i32) {
    %c0_i32 = arith.constant 0 : i32
    %c0_i32_0 = arith.constant 0 : i32
    %c0_i32_1 = arith.constant 0 : i32
    return %c0_i32, %c0_i32_0 : i32, i32
  }
  func.func @transform_3(%arg0: i32, %arg1: i32) -> (i32, i32) {
    %c0_i32 = arith.constant 0 : i32
    %c0_i32_0 = arith.constant 0 : i32
    return %arg0, %c0_i32 : i32, i32
  }
}

</mosaic_0001>

<bundles_post_ra>
// kernel: model_with_normalize.1
= control target key start
LH: loop header
LB: loop body
LE: loop exit
PB: predicated region body
PF: predicated region fallthrough
CT: control target
= control target key end

     0   :  { %8 = vsyncpa [#allocation4], 0  ;;  %s1031_s12 = smov [#allocation3]   ;;  %s1084_s0 = inlined_call_operand.vmem [shape: bf16[8,1024], index: 0, kind: input, shape index: {}]   ;;  %s1085_s1 = inlined_call_operand.hbm [shape: bf16[1024,128], index: 1, kind: input, shape index: {}]   ;;  %s1086_s2 = inlined_call_operand.vmem [shape: f32[1,128], index: 2, kind: input, shape index: {}]   ;;  %s1087_s3 = inlined_call_operand.vmem [shape: f32[8,128], index: 3, kind: output, shape index: {}]  }
   0x1   :  { %s16_s13 = sshll.u32 %s1031_s12, 4  ;;  %s1007_s16 = scalar_lea.hbm %s1085_s1, 8192  ;;  %s17_s13 = int_to_ptr.vmem [resolvable:$true] %s16_s13 }
   0x2   :  { %p1008_p0 = scmp.ne.s32.totalorder %s1085_s1, %s1007_s16  ;;  %p1011_p1 = scmp.lt.u32.totalorder %s1007_s16, %s1085_s1 }
   0x4   :  { %p1013_p2 = pnand %p1011_p1, %p1008_p0 }
   0x6   :  { %1016 = shalt.err (!%p1013_p2)
}
   0x7   :  { %s1017_s21 = scalar_lea.vmem %s17_s13, 8192  ;;  %p1022_p4 = scmp.lt.s32.totalorder %s17_s13, %s17_s13 }
   0x8   :  { %p1018_p3 = scmp.ne.s32.totalorder %s17_s13, %s1017_s21  ;;  %p1023_p5 = scmp.lt.s32.totalorder %s1017_s21, %s1017_s21 }
   0xa   :  { %p1024_p6 = por %p1023_p5, %p1022_p4 }
   0xc   :  { %p1025_p7 = pnand %p1024_p6, %p1018_p3 }
   0xe   :  { %1028 = shalt.err (!%p1025_p7)
}
   0xf   :  { %s1032_s22 = smov 64   ;;  %s1033_s23 = smov 4  }
  0x10   :  { %22 = dma.hbm_to_vmem [thread:$0]  %s1085_s1, 8192, %s17_s13, [#allocation4], %s1032_s22, %s1032_s22, %s1033_s23  }
  0x11   :  { %1029 = dma.done.wait [#allocation4], 8192  }
  0x12   :  { %1030 = vsyncadd [#allocation4], 4294959104  ;;  %v933_v0 = vld [vmem:[#allocation3 + $0x40] sm:$0xff]   ;;  %v937_v4 = vld [vmem:[#allocation3 + $0x48] sm:$0xff]  }
  0x13   :  { %v934_v1 = vld [vmem:[#allocation3 + $0xc0] sm:$0xff]   ;;  %842 = vmatprep.subr.bf16.mxu0 %v933_v0  ;;  %v938_v5 = vld [vmem:[#allocation3 + $0xc8] sm:$0xff]   ;;  %v941_v8 = vld [vmem:[#allocation3 + $0x50] sm:$0xff]  }
  0x14   :  { %v935_v2 = vld [vmem:[#allocation3] sm:$0xff]   ;;  %864 = vmatprep.subr.bf16.mxu1 %v934_v1  ;;  %v939_v6 = vld [vmem:[#allocation3 + $0x8] sm:$0xff]   ;;  %v942_v9 = vld [vmem:[#allocation3 + $0xd0] sm:$0xff]  }
  0x15   :  { %v936_v3 = vld [vmem:[#allocation3 + $0x80] sm:$0xff]   ;;  %843 = vmatpush3.bf16.msra.mxu0 %v935_v2  ;;  %v940_v7 = vld [vmem:[#allocation3 + $0x88] sm:$0xff]   ;;  %v943_v10 = vld [vmem:[#allocation3 + $0x10] sm:$0xff]  }
  0x16   :  { %865 = vmatpush3.bf16.msra.mxu1 %v936_v3  ;;  %844 = vmatprep.subr.bf16.mxu0 %v937_v4  ;;  %v944_v11 = vld [vmem:[#allocation3 + $0x90] sm:$0xff]   ;;  %v945_v12 = vld [vmem:[#allocation3 + $0x58] sm:$0xff]   ;;  %v949_v16 = vld [vmem:[#allocation3 + $0x60] sm:$0xff]  }
  0x17   :  { %866 = vmatprep.subr.bf16.mxu1 %v938_v5  ;;  %v946_v13 = vld [vmem:[#allocation3 + $0xd8] sm:$0xff]   ;;  %v950_v17 = vld [vmem:[#allocation3 + $0xe0] sm:$0xff]   ;;  %v953_v20 = vld [vmem:[#allocation3 + $0x68] sm:$0xff]  }
  0x18   :  { %v947_v14 = vld [vmem:[#allocation3 + $0x18] sm:$0xff]   ;;  %v951_v18 = vld [vmem:[#allocation3 + $0x20] sm:$0xff]   ;;  %v954_v21 = vld [vmem:[#allocation3 + $0xe8] sm:$0xff]  }
  0x19   :  { %845 = vmatpush3.bf16.msra.mxu0 %v939_v6  ;;  %v948_v15 = vld [vmem:[#allocation3 + $0x98] sm:$0xff]   ;;  %v952_v19 = vld [vmem:[#allocation3 + $0xa0] sm:$0xff]   ;;  %v955_v22 = vld [vmem:[#allocation3 + $0x28] sm:$0xff]  }
  0x1a   :  { %867 = vmatpush3.bf16.msra.mxu1 %v940_v7  ;;  %846 = vmatprep.subr.bf16.mxu0 %v941_v8  ;;  %v956_v23 = vld [vmem:[#allocation3 + $0xa8] sm:$0xff]   ;;  %v957_v24 = vld [vmem:[#allocation3 + $0x70] sm:$0xff]   ;;  %v961_v28 = vld [vmem:[#allocation3 + $0x78] sm:$0xff]  }
  0x1b   :  { %868 = vmatprep.subr.bf16.mxu1 %v942_v9  ;;  %v958_v25 = vld [vmem:[#allocation3 + $0xf0] sm:$0xff]   ;;  %v962_v29 = vld [vmem:[#allocation3 + $0xf8] sm:$0xff]   ;;  %v29_v32 = vld [vmem:[%s1084_s0] sm:$0xff] }
  0x1c   :  { %v959_v26 = vld [vmem:[#allocation3 + $0x30] sm:$0xff]   ;;  %v963_v30 = vld [vmem:[#allocation3 + $0x38] sm:$0xff]   ;;  %v30_v33 = vld [vmem:[%s1084_s0 + $0x8] sm:$0xff]  ;;  %v769_v34 = vcombine.low %v29_v32, %v29_v32  ;;  %v770_v35 = vcombine.high %v29_v32, %v29_v32 }
  0x1d   :  { %847 = vmatpush3.bf16.msra.mxu0 %v943_v10  ;;  %v960_v27 = vld [vmem:[#allocation3 + $0xb0] sm:$0xff]   ;;  %v964_v31 = vld [vmem:[#allocation3 + $0xb8] sm:$0xff]   ;;  %v771_v36 = vcombine.low %v30_v33, %v30_v33  ;;  %v772_v37 = vcombine.high %v30_v33, %v30_v33  ;;  %v969_v38 = vld [vmem:[#allocation3 + $0x140] sm:$0xff]  }
  0x1e   :  { %869 = vmatpush3.bf16.msra.mxu1 %v944_v11  ;;  %848 = vmatprep.subr.bf16.mxu0 %v945_v12  ;;  %v970_v39 = vld [vmem:[#allocation3 + $0x1c0] sm:$0xff]   ;;  %v973_v42 = vld [vmem:[#allocation3 + $0x148] sm:$0xff]   ;;  %v977_v46 = vld [vmem:[#allocation3 + $0x150] sm:$0xff]  }
  0x1f   :  { %870 = vmatprep.subr.bf16.mxu1 %v946_v13  ;;  %605 = vmatprep.mubr.bf16.mxu0 %v770_v35  ;;  %v971_v40 = vld [vmem:[#allocation3 + $0x100] sm:$0xff]   ;;  %v974_v43 = vld [vmem:[#allocation3 + $0x1c8] sm:$0xff]   ;;  %v978_v47 = vld [vmem:[#allocation3 + $0x1d0] sm:$0xff]  }
  0x20   :  { %645 = vmatprep.mubr.bf16.mxu1 %v772_v37  ;;  %v972_v41 = vld [vmem:[#allocation3 + $0x180] sm:$0xff]   ;;  %v975_v44 = vld [vmem:[#allocation3 + $0x108] sm:$0xff]   ;;  %v979_v48 = vld [vmem:[#allocation3 + $0x110] sm:$0xff]  }
  0x21   :  { %849 = vmatpush3.bf16.msra.mxu0 %v947_v14  ;;  %v976_v45 = vld [vmem:[#allocation3 + $0x188] sm:$0xff]   ;;  %v980_v49 = vld [vmem:[#allocation3 + $0x190] sm:$0xff]   ;;  %v981_v50 = vld [vmem:[#allocation3 + $0x158] sm:$0xff]  }
  0x22   :  { %871 = vmatpush3.bf16.msra.mxu1 %v948_v15  ;;  %850 = vmatprep.subr.bf16.mxu0 %v949_v16  ;;  %v982_v51 = vld [vmem:[#allocation3 + $0x1d8] sm:$0xff]   ;;  %v985_v54 = vld [vmem:[#allocation3 + $0x160] sm:$0xff]   ;;  %v989_v58 = vld [vmem:[#allocation3 + $0x168] sm:$0xff]  }
  0x23   :  { %872 = vmatprep.subr.bf16.mxu1 %v950_v17  ;;  %v983_v52 = vld [vmem:[#allocation3 + $0x118] sm:$0xff]   ;;  %v986_v55 = vld [vmem:[#allocation3 + $0x1e0] sm:$0xff]   ;;  %v990_v59 = vld [vmem:[#allocation3 + $0x1e8] sm:$0xff]  }
  0x24   :  { %v984_v53 = vld [vmem:[#allocation3 + $0x198] sm:$0xff]   ;;  %v987_v56 = vld [vmem:[#allocation3 + $0x120] sm:$0xff]   ;;  %v991_v60 = vld [vmem:[#allocation3 + $0x128] sm:$0xff]  }
  0x25   :  { %851 = vmatpush3.bf16.msra.mxu0 %v951_v18  ;;  %v988_v57 = vld [vmem:[#allocation3 + $0x1a0] sm:$0xff]   ;;  %v992_v61 = vld [vmem:[#allocation3 + $0x1a8] sm:$0xff]   ;;  %v993_v62 = vld [vmem:[#allocation3 + $0x170] sm:$0xff]  }
  0x26   :  { %873 = vmatpush3.bf16.msra.mxu1 %v952_v19  ;;  %852 = vmatprep.subr.bf16.mxu0 %v953_v20  ;;  %v994_v63 = vld [vmem:[#allocation3 + $0x1f0] sm:$0xff]   ;;  %v997_v2 = vld [vmem:[#allocation3 + $0x178] sm:$0xff]  }
  0x27   :  { %874 = vmatprep.subr.bf16.mxu1 %v954_v21  ;;  %v995_v0 = vld [vmem:[#allocation3 + $0x130] sm:$0xff]   ;;  %v998_v3 = vld [vmem:[#allocation3 + $0x1f8] sm:$0xff]  }
  0x28   :  { %v996_v1 = vld [vmem:[#allocation3 + $0x1b0] sm:$0xff]   ;;  %v999_v4 = vld [vmem:[#allocation3 + $0x138] sm:$0xff]  }
  0x29   :  { %853 = vmatpush3.bf16.msra.mxu0 %v955_v22  ;;  %v1000_v5 = vld [vmem:[#allocation3 + $0x1b8] sm:$0xff]   ;;  %v31_v6 = vld [vmem:[%s1084_s0 + $0x10] sm:$0xff] }
  0x2a   :  { %875 = vmatpush3.bf16.msra.mxu1 %v956_v23  ;;  %854 = vmatprep.subr.bf16.mxu0 %v957_v24  ;;  %v773_v7 = vcombine.low %v31_v6, %v31_v6  ;;  %v774_v8 = vcombine.high %v31_v6, %v31_v6  ;;  %v32_v9 = vld [vmem:[%s1084_s0 + $0x18] sm:$0xff] }
  0x2b   :  { %876 = vmatprep.subr.bf16.mxu1 %v958_v25  ;;  %v775_v10 = vcombine.low %v32_v9, %v32_v9  ;;  %v776_v11 = vcombine.high %v32_v9, %v32_v9 }
  0x2d   :  { %855 = vmatpush3.bf16.msra.mxu0 %v959_v26 }
  0x2e   :  { %877 = vmatpush3.bf16.msra.mxu1 %v960_v27  ;;  %856 = vmatprep.subr.bf16.mxu0 %v961_v28 }
  0x2f   :  { %878 = vmatprep.subr.bf16.mxu1 %v962_v29 }
  0x31   :  { %857 = vmatpush3.bf16.msra.mxu0 %v963_v30 }
  0x32   :  { %879 = vmatpush3.bf16.msra.mxu1 %v964_v31  ;;  %886 = vmatprep.subr.bf16.mxu0 %v969_v38 }
  0x33   :  { %908 = vmatprep.subr.bf16.mxu1 %v970_v39 }
  0x34   :  { %606 = vmatmul.mubr.bf16.vlgmr.msra.gmra.mrb[0].mxu0 %v769_v34  ;;  %v841_v34 = vld [vmem:[%s1086_s2] ss:$0 sm:$0xff] }
  0x35   :  { %646 = vmatmul.mubr.bf16.vlgmr.msra.gmra.mrb[0].mxu1 %v771_v36  ;;  %887 = vmatpush3.bf16.msra.mxu0 %v971_v40 }
  0x36   :  { %909 = vmatpush3.bf16.msra.mxu1 %v972_v41  ;;  %888 = vmatprep.subr.bf16.mxu0 %v973_v42 }
  0x37   :  { %910 = vmatprep.subr.bf16.mxu1 %v974_v43  ;;  %685 = vmatprep.mubr.bf16.mxu0 %v774_v8 }
  0x38   :  { %725 = vmatprep.mubr.bf16.mxu1 %v776_v11 }
  0x39   :  { %889 = vmatpush3.bf16.msra.mxu0 %v975_v44 }
  0x3a   :  { %911 = vmatpush3.bf16.msra.mxu1 %v976_v45  ;;  %890 = vmatprep.subr.bf16.mxu0 %v977_v46 }
  0x3b   :  { %912 = vmatprep.subr.bf16.mxu1 %v978_v47 }
  0x3d   :  { %891 = vmatpush3.bf16.msra.mxu0 %v979_v48 }
  0x3e   :  { %913 = vmatpush3.bf16.msra.mxu1 %v980_v49  ;;  %892 = vmatprep.subr.bf16.mxu0 %v981_v50 }
  0x3f   :  { %914 = vmatprep.subr.bf16.mxu1 %v982_v51 }
  0x41   :  { %893 = vmatpush3.bf16.msra.mxu0 %v983_v52 }
  0x42   :  { %915 = vmatpush3.bf16.msra.mxu1 %v984_v53  ;;  %894 = vmatprep.subr.bf16.mxu0 %v985_v54 }
  0x43   :  { %916 = vmatprep.subr.bf16.mxu1 %v986_v55 }
  0x45   :  { %895 = vmatpush3.bf16.msra.mxu0 %v987_v56 }
  0x46   :  { %917 = vmatpush3.bf16.msra.mxu1 %v988_v57  ;;  %896 = vmatprep.subr.bf16.mxu0 %v989_v58 }
  0x47   :  { %918 = vmatprep.subr.bf16.mxu1 %v990_v59 }
  0x49   :  { %897 = vmatpush3.bf16.msra.mxu0 %v991_v60 }
  0x4a   :  { %919 = vmatpush3.bf16.msra.mxu1 %v992_v61  ;;  %898 = vmatprep.subr.bf16.mxu0 %v993_v62 }
  0x4b   :  { %920 = vmatprep.subr.bf16.mxu1 %v994_v63 }
  0x4d   :  { %899 = vmatpush3.bf16.msra.mxu0 %v995_v0 }
  0x4e   :  { %921 = vmatpush3.bf16.msra.mxu1 %v996_v1  ;;  %900 = vmatprep.subr.bf16.mxu0 %v997_v2 }
  0x4f   :  { %922 = vmatprep.subr.bf16.mxu1 %v998_v3 }
  0x51   :  { %901 = vmatpush3.bf16.msra.mxu0 %v999_v4 }
  0x52   :  { %923 = vmatpush3.bf16.msra.mxu1 %v1000_v5 }
  0x54   :  { %686 = vmatmul.mubr.bf16.vlgmr.msra.gmra.mrb[4].mxu0 %v773_v7 }
  0x55   :  { %726 = vmatmul.mubr.bf16.vlgmr.msra.gmra.mrb[4].mxu1 %v775_v10 }
 0x107   :  { %v858_v12 = vpop.f32.mrb[0].mxu0 }
 0x108   :  { %v880_v13 = vpop.f32.mrb[0].mxu1  ;;  %v859_v14 = vpop.f32.mrb[1].mxu0 }
 0x109   :  { %v881_v15 = vpop.f32.mrb[1].mxu1  ;;  %v860_v16 = vadd.f32 %v859_v14, %v858_v12  ;;  %v861_v18 = vpop.f32.mrb[2].mxu0 }
 0x10a   :  { %v882_v17 = vadd.f32 %v881_v15, %v880_v13  ;;  %v883_v19 = vpop.f32.mrb[2].mxu1  ;;  %v862_v20 = vpop.f32.mrb[3].mxu0 }
 0x10b   :  { %v884_v21 = vpop.f32.mrb[3].mxu1 }
 0x10c   :  { %v648_v22 = vadd.f32 %v882_v17, %v860_v16 }
 0x127   :  { %v902_v23 = vpop.f32.mrb[4].mxu0 }
 0x128   :  { %v924_v24 = vpop.f32.mrb[4].mxu1  ;;  %v903_v25 = vpop.f32.mrb[5].mxu0 }
 0x129   :  { %v925_v26 = vpop.f32.mrb[5].mxu1  ;;  %v904_v27 = vadd.f32 %v903_v25, %v902_v23  ;;  %v905_v29 = vpop.f32.mrb[6].mxu0 }
 0x12a   :  { %v926_v28 = vadd.f32 %v925_v26, %v924_v24  ;;  %v927_v30 = vpop.f32.mrb[6].mxu1  ;;  %v906_v31 = vpop.f32.mrb[7].mxu0 }
 0x12b   :  { %v928_v32 = vpop.f32.mrb[7].mxu1  ;;  %v688_v33 = vadd.f32 %v904_v27, %v648_v22 }
 0x12d   :  { %v728_v35 = vadd.f32 %v926_v28, %v688_v33 }
 0x12f   :  { %v756_v36 = vadd.f32 %v841_v34, %v728_v35 }
 0x131   :  { %v757_v37 = vmul.f32 %v756_v36, %v756_v36 }
 0x133   :  { %758 = vadd.xlane.f32.xlu0 %v757_v37 }
 0x1c0   :  { %v759_v38 = vpop.xlane.xlu0 %758 }
 0x1c1   :  { %v760_v39 = vmax.f32 %v759_v38, 1e-24 }
 0x1c3   :  { %1005 = vrsqrt.f32 %v760_v39 }
 0x1cd   :  { %v1006_v40 = vpop.eup %1005 }
 0x1ce   :  { %v762_v41 = vmul.f32 %v1006_v40, %v756_v36 }
 0x1d0   :  { %763 = vst [vmem:[%s1087_s3] sm:$0xff] %v762_v41 }
 0x1d1   :  { %768 = vsyncpa [#allocation4], 1 }

</bundles_post_ra>
